<compile_context>
chip_gen: v6e
topology: v6e:2x2x1
jax: 0.10.0
libtpu: 0.0.40
codegen_flags: <defaults>
</compile_context>

<pallas_src>
import numpy as np
import jax
import jax.numpy as jnp
from jax import lax
from jax.experimental import pallas as pl
from jax.experimental.pallas import tpu as pltpu

# ---- DRMM config (mirrors DRMM_class.__init__ config dict) -------------------
NBINS = 5
NODES = 5
NB = NBINS + 1            # histogram width (6)
HIST_TYPE = "LCH"         # one of {"CH", "NH", "LCH"}
GATE_TYPE = "IDF"         # TODO(synk): "TV" gate (Linear(emb_dim,1) on query vectors) not wired in-kernel
BIN_UPPERBOUNDS = np.linspace(-1.0, 1.0, NB)[1:].astype(np.float32)   # 5 upper bounds

LANE = 128
SUB = 8


def _ceil_to(x, m):
    return ((x + m - 1) // m) * m


def _pick_bb(B, max_bb=8):
    """Largest batch block <= max_bb dividing B that leaves >= 2 grid steps
    (keeps both v7x TensorCores busy; amortizes per-step overhead elsewhere)."""
    best = 1
    for bb in range(1, min(max_bb, B) + 1):
        if B % bb == 0 and B // bb >= 2:
            best = bb
    return best


def _rcp(x):
    """EUP approximate reciprocal + one Newton step (tiny tensors only)."""
    r = pl.reciprocal(x, approx=True)
    return r * (2.0 - x * r)


# ------------------------------ Pallas kernel ---------------------------------
def drmm_kernel(q_ref, d_ref, dside_ref, qside_ref, cmat_ref, pvec_ref, out_ref):
    f32 = jnp.float32
    bf16 = jnp.bfloat16
    BB = q_ref.shape[0]

    # Grid-invariant blocks (constant index_map -> DMA'd once, stay resident).
    cm = cmat_ref[...]                                   # (NB*Tdp, NB) bf16
    P = pvec_ref[...]                                    # (8, 8) f32
    w1 = P[0:NB, 0:NODES]                                # ffw[0].weight^T (NB, NODES)
    b1 = P[NB:NB + 1, 0:NODES]                           # (1, NODES)
    w2 = P[NB + 1:NB + 2, 0:NODES]                       # ffw[2].weight   (1, NODES)
    b2 = P[NB:NB + 1, NODES:NODES + 1]                   # (1, 1)
    out_w = P[NB:NB + 1, NODES + 2:NODES + 3]            # (1, 1)
    out_b = P[NB + 1:NB + 2, NODES:NODES + 1]            # (1, 1)

    # Static unroll over the batch block (BB is small and static; equivalent to
    # lax.fori_loop(..., unroll=True) and keeps all ref indices static).
    for i in range(BB):
        q = q_ref[i]                                     # (Tqp, Hp) bf16
        d = d_ref[i]                                     # (Tdp, Hp) bf16
        qs = qside_ref[i]                                # (Tqp, 2)  f32
        ds = dside_ref[i]                                # (2, Tdp)  f32
        inv_qn = qs[:, 0:1]                              # (Tqp, 1)  1/q_norm (precomputed)
        gate = qs[:, 1:2]                                # (Tqp, 1)  softmax'ed gate (wrapper)
        inv_dn = ds[0:1, :]                              # (1, Tdp)  1/d_norm (precomputed)
        dbias = ds[1:2, :]                               # (1, Tdp)  (1 - mask) * 1e7

        # --- cosine similarity: bf16 NT matmul on the MXU, f32 accumulate ------
        raw = lax.dot_general(q, d, (((1,), (1,)), ((), ())),
                              preferred_element_type=f32)            # (Tqp, Tdp)
        sim = raw * inv_qn * inv_dn + dbias

        # --- matching histogram counted on the MXU -----------------------------
        # 5 cumulative step indicators + the exact-match band, concatenated along
        # lanes (Tdp is a 128-multiple); the resident bf16 {-1,0,1} matrix both
        # sums over Tdp and differences adjacent cumulative bins in ONE dot.
        planes = [(sim < float(ub)).astype(bf16) for ub in BIN_UPPERBOUNDS]
        planes.append((jnp.abs(sim - 1.0) < 1e-3).astype(bf16))
        ind = jnp.concatenate(planes, axis=1)                         # (Tqp, NB*Tdp) bf16
        hist = jnp.dot(ind, cm, preferred_element_type=f32) + 1.0     # (Tqp, NB)

        if HIST_TYPE == "NH":
            hist = hist * _rcp(jnp.sum(hist, axis=1, keepdims=True))
        elif HIST_TYPE == "LCH":
            hist = jnp.log(hist)
        # "CH": raw counts

        # --- ffw: Linear(NB->NODES) + tanh + Linear(NODES->1) + tanh ----------
        z1 = jnp.tanh(jnp.dot(hist, w1, preferred_element_type=f32) + b1)   # (Tqp, NODES)
        ffw = jnp.tanh(jnp.sum(z1 * w2, axis=1, keepdims=True) + b2)        # (Tqp, 1)

        # --- gate-weighted sum + output Linear(1,1) -----------------------------
        s = jnp.sum(gate * ffw, axis=0, keepdims=True)                      # (1, 1)
        score = s * out_w + out_b
        out_ref[i, :, :] = jnp.broadcast_to(score, (1, LANE))               # lane-dense store


# -------------------------- one-time parameter setup ---------------------------
def drmm_prepare(params):
    """Cache-once setup: pad+bf16 the embedding table, per-token reciprocal
    norms, and the packed tiny-parameter (8,8) tile."""
    emb = params["emb"].astype(jnp.float32)
    H = emb.shape[1]
    Hp = _ceil_to(H, LANE)
    emb_bf = jnp.pad(emb, ((0, 0), (0, Hp - H))).astype(jnp.bfloat16)
    # Norms from the bf16-rounded rows: the bf16 MXU dot of two identical tokens
    # then lands (almost exactly) at cosine 1, keeping the 0.999<sim<1.001
    # exact-match band robust despite bf16 inputs.
    emb_rt = emb_bf.astype(jnp.float32)
    inv_norm = 1.0 / (jnp.sqrt(jnp.sum(emb_rt * emb_rt, axis=1) + 1e-7) + 1e-7)   # (V,)

    pvec = jnp.zeros((NB + 2, NODES + 3), jnp.float32)
    pvec = pvec.at[0:NB, 0:NODES].set(params["w1_t"])
    pvec = pvec.at[NB, 0:NODES].set(params["b1"])
    pvec = pvec.at[NB + 1, 0:NODES].set(params["w2"])
    pvec = pvec.at[NB, NODES].set(params["b2"])
    pvec = pvec.at[NB, NODES + 2].set(params["out_w"])
    pvec = pvec.at[NB + 1, NODES].set(params["out_b"])

    return {"emb_bf": emb_bf,
            "inv_norm": inv_norm,
            "pvec": pvec,
            "gate_w": jnp.asarray(params["gate_w"], jnp.float32)}


# ------------------------------ forward (wrapper) -------------------------------
def drmm_forward(sentence, query_sentence, query_idf, prep):
    emb_bf = prep["emb_bf"]
    inv_norm = prep["inv_norm"]
    Hp = emb_bf.shape[1]
    B, Td = sentence.shape
    _, Tq = query_sentence.shape
    Tdp = _ceil_to(Td, LANE)                              # lane-dense document axis
    Tqp = _ceil_to(Tq, SUB)
    BB = _pick_bb(B)
    n_steps = B // BB

    # ---- XLA glue (pad ids, gather bf16 embeddings, pack side inputs) ----------
    sent_p = jnp.pad(sentence, ((0, 0), (0, Tdp - Td)))
    qsent_p = jnp.pad(query_sentence, ((0, 0), (0, Tqp - Tq)))

    q_bf = emb_bf[qsent_p]                                # (B, Tqp, Hp) bf16
    d_bf = emb_bf[sent_p]                                 # (B, Tdp, Hp) bf16 (no transpose)

    # doc side: [1/d_norm ; (1 - mask) * 1e7] -> one (B, 2, Tdp) array
    dside = jnp.stack([inv_norm[sent_p],
                       (sent_p == 0).astype(jnp.float32) * 1e7], axis=1)

    # query side: gate softmax computed here (f32, matches reference), packed
    # with 1/q_norm -> one (B, Tqp, 2) array; padded positions get gate 0.
    q_mask = (query_sentence != 0).astype(jnp.float32)
    logits = query_idf.astype(jnp.float32) * prep["gate_w"] + (1.0 - q_mask) * (-1e7)
    gate = jax.nn.softmax(logits, axis=1)
    gate_p = jnp.pad(gate, ((0, 0), (0, Tqp - Tq)))
    qside = jnp.stack([inv_norm[qsent_p], gate_p], axis=-1)

    # constant count/difference matrix (built once at trace time, bf16, resident)
    grp = np.arange(NB * Tdp)[:, None] // Tdp
    col = np.arange(NB)[None, :]
    cmat_np = (grp == col).astype(np.float32) \
        - ((grp == col - 1) & (col < NBINS)).astype(np.float32)
    cmat = jnp.asarray(cmat_np, jnp.bfloat16)             # (NB*Tdp, NB)

    # deeper pipelining on the big inputs only when there are enough grid steps
    if n_steps >= 3:
        q_spec = pl.BlockSpec((BB, Tqp, Hp), lambda b: (b, 0, 0),
                              pipeline_mode=pl.Buffered(3))
        d_spec = pl.BlockSpec((BB, Tdp, Hp), lambda b: (b, 0, 0),
                              pipeline_mode=pl.Buffered(3))
    else:
        q_spec = pl.BlockSpec((BB, Tqp, Hp), lambda b: (b, 0, 0))
        d_spec = pl.BlockSpec((BB, Tdp, Hp), lambda b: (b, 0, 0))

    out = pl.pallas_call(
        drmm_kernel,
        out_shape=jax.ShapeDtypeStruct((B, 1, LANE), jnp.float32),
        grid=(n_steps,),
        in_specs=[
            q_spec,
            d_spec,
            pl.BlockSpec((BB, 2, Tdp), lambda b: (b, 0, 0)),
            pl.BlockSpec((BB, Tqp, 2), lambda b: (b, 0, 0)),
            pl.BlockSpec((NB * Tdp, NB), lambda b: (0, 0)),           # resident
            pl.BlockSpec((NB + 2, NODES + 3), lambda b: (0, 0)),      # resident
        ],
        out_specs=pl.BlockSpec((BB, 1, LANE), lambda b: (b, 0, 0)),
        compiler_params=pltpu.CompilerParams(
            dimension_semantics=("parallel",),
            vmem_limit_bytes=32 * 1024 * 1024,
        ),
    )(q_bf, d_bf, dside, qside, cmat, prep["pvec"])
    # TODO(synk): for very long documents, add a second ("arbitrary") grid axis
    # over Td with VMEM-scratch cumulative counts; keep tiles within v7x's 64 MiB.
    return out[:, 0, :1]                                   # (B, 1)


# ------------------------- pure-JAX reference (check) --------------------------
def drmm_reference(sentence, query_sentence, query_idf, params):
    emb = params["emb"]
    q_mask = (query_sentence != 0).astype(jnp.float32)
    d_mask = (sentence != 0).astype(jnp.float32)
    q = emb[query_sentence].astype(jnp.float32)
    d = emb[sentence].astype(jnp.float32)
    q_norm = jnp.sqrt(jnp.sum(q * q, -1, keepdims=True) + 1e-7) + 1e-7
    d_norm = jnp.sqrt(jnp.sum(d * d, -1) + 1e-7) + 1e-7
    sim = jnp.einsum('bqh,bdh->bqd', q, d, precision=jax.lax.Precision.HIGHEST)
    sim = sim / q_norm / d_norm[:, None, :]
    sim = sim + (1.0 - d_mask[:, None, :]) * 1e7
    cum = jnp.stack([(sim < float(ub)).astype(jnp.float32).sum(-1)
                     for ub in BIN_UPPERBOUNDS], axis=-1)
    exact = ((sim > 0.999) & (sim < 1.001)).astype(jnp.float32).sum(-1, keepdims=True)
    hist = jnp.concatenate([cum[..., :1], cum[..., 1:] - cum[..., :-1], exact], axis=-1) + 1.0
    if HIST_TYPE == "NH":
        hist = hist / hist.sum(-1, keepdims=True)
    elif HIST_TYPE == "LCH":
        hist = jnp.log(hist)
    z1 = jnp.tanh(hist @ params["w1_t"] + params["b1"][None, None, :])
    ffw_vec = jnp.tanh(jnp.sum(z1 * params["w2"][None, None, :], -1) + params["b2"])
    logits = query_idf.astype(jnp.float32) * params["gate_w"] + (1.0 - q_mask) * -1e7
    gate = jax.nn.softmax(logits, axis=1)
    s = jnp.sum(gate * ffw_vec, -1, keepdims=True)
    return s * params["out_w"] + params["out_b"]


# ----------------------------------- main --------------------------------------
if __name__ == "__main__":
    B, Tq, Td, H, V = 2, 8, 16, 32, 50
    key = jax.random.PRNGKey(0)
    ks = jax.random.split(key, 12)

    # deterministic parameter init (shapes from DRMM_class.__init__)
    emb = jax.random.normal(ks[0], (V, H), jnp.float32) * 0.5
    emb = emb.at[0].set(0.0)                                     # padding row
    w1 = jax.random.uniform(ks[1], (NODES, NBINS + 1), minval=-0.1, maxval=0.1)  # ffw[0].weight
    b1 = jax.random.uniform(ks[2], (NODES,), minval=-0.1, maxval=0.1)
    w2 = jax.random.uniform(ks[3], (1, NODES), minval=-0.1, maxval=0.1)          # ffw[2].weight
    b2 = jax.random.uniform(ks[4], (1,), minval=-0.1, maxval=0.1)
    gate_w = jax.random.uniform(ks[5], (1, 1), minval=-0.01, maxval=0.01)        # gates (IDF)
    out_w = jax.random.uniform(ks[6], (1, 1), minval=-1.0, maxval=1.0)           # output_layer
    out_b = jax.random.uniform(ks[7], (1,), minval=-1.0, maxval=1.0)

    params = {
        "emb": emb,
        "w1_t": jnp.asarray(w1.T, jnp.float32),     # (nbins+1, nodes)
        "b1": jnp.asarray(b1, jnp.float32),         # (nodes,)
        "w2": jnp.asarray(w2[0], jnp.float32),      # (nodes,)
        "b2": b2[0].astype(jnp.float32),
        "gate_w": gate_w[0, 0].astype(jnp.float32),
        "out_w": out_w[0, 0].astype(jnp.float32),
        "out_b": out_b[0].astype(jnp.float32),
    }

    # deterministic example inputs (token ids, 0 = padding)
    sentence = jax.random.randint(ks[8], (B, Td), 1, V)
    sentence = sentence.at[:, Td - 4:].set(0)
    query_sentence = jax.random.randint(ks[9], (B, Tq), 1, V)
    query_sentence = query_sentence.at[1, Tq - 2:].set(0)
    query_idf = jax.random.uniform(ks[10], (B, Tq), minval=0.0, maxval=5.0)

    prep = drmm_prepare(params)                     # one-time cached setup
    fwd = jax.jit(drmm_forward)
    score = jax.block_until_ready(fwd(sentence, query_sentence, query_idf, prep))
    ref = jax.block_until_ready(drmm_reference(sentence, query_sentence, query_idf, params))

    assert score.shape == (B, 1)
    # bf16 MXU inputs for the similarity matmul can shift a count at a histogram
    # bin edge by +/-1 vs the f32 reference, so allow a slightly wider tolerance.
    np.testing.assert_allclose(np.asarray(score), np.asarray(ref), atol=2e-2, rtol=2e-2)
    print("KERNEL_OK")
</pallas_src>

<mosaic_0001>
module attributes {stable_mosaic.version = 11 : i64} {
  func.func @drmm_kernel(%arg0: i32, %arg1: memref<1x8x128xbf16, #tpu.memory_space<vmem>>, %arg2: memref<1x128x128xbf16, #tpu.memory_space<vmem>>, %arg3: memref<1x2x128xf32, #tpu.memory_space<vmem>>, %arg4: memref<1x8x2xf32, #tpu.memory_space<vmem>>, %arg5: memref<768x6xbf16, #tpu.memory_space<vmem>>, %arg6: memref<8x8xf32, #tpu.memory_space<vmem>>, %arg7: memref<1x1x128xf32, #tpu.memory_space<vmem>>) attributes {dimension_semantics = [#tpu.dimension_semantics<parallel>], iteration_bounds = array<i64: 2>, scalar_prefetch = 0 : i64, scratch_operands = 0 : i64, tpu.core_type = #tpu.core_type<tc>, window_params = [{transform_indices = @transform_0, window_bounds = array<i64: 1, 8, 128>}, {transform_indices = @transform_1, window_bounds = array<i64: 1, 128, 128>}, {transform_indices = @transform_2, window_bounds = array<i64: 1, 2, 128>}, {transform_indices = @transform_3, window_bounds = array<i64: 1, 8, 2>}, {pipeline_mode = #tpu.pipeline_mode<synchronous>, transform_indices = @transform_4, window_bounds = array<i64: 768, 6>}, {pipeline_mode = #tpu.pipeline_mode<synchronous>, transform_indices = @transform_5, window_bounds = array<i64: 8, 8>}, {transform_indices = @transform_6, window_bounds = array<i64: 1, 1, 128>}]} {
    %c0 = arith.constant 0 : index
    %c0_0 = arith.constant 0 : index
    %0 = vector.load %arg5[%c0, %c0_0] : memref<768x6xbf16, #tpu.memory_space<vmem>>, vector<768x6xbf16>
    %c0_1 = arith.constant 0 : index
    %c0_2 = arith.constant 0 : index
    %1 = vector.load %arg6[%c0_1, %c0_2] : memref<8x8xf32, #tpu.memory_space<vmem>>, vector<8x8xf32>
    %2 = vector.extract_strided_slice %1 {offsets = [0, 0], sizes = [6, 5], strides = [1, 1]} : vector<8x8xf32> to vector<6x5xf32>
    %3 = vector.extract_strided_slice %1 {offsets = [6, 0], sizes = [1, 5], strides = [1, 1]} : vector<8x8xf32> to vector<1x5xf32>
    %4 = vector.extract_strided_slice %1 {offsets = [7, 0], sizes = [1, 5], strides = [1, 1]} : vector<8x8xf32> to vector<1x5xf32>
    %5 = vector.extract_strided_slice %1 {offsets = [6, 5], sizes = [1, 1], strides = [1, 1]} : vector<8x8xf32> to vector<1x1xf32>
    %6 = vector.extract_strided_slice %1 {offsets = [6, 7], sizes = [1, 1], strides = [1, 1]} : vector<8x8xf32> to vector<1x1xf32>
    %7 = vector.extract_strided_slice %1 {offsets = [7, 5], sizes = [1, 1], strides = [1, 1]} : vector<8x8xf32> to vector<1x1xf32>
    %c0_3 = arith.constant 0 : index
    %c0_4 = arith.constant 0 : index
    %c0_5 = arith.constant 0 : index
    %8 = vector.load %arg1[%c0_3, %c0_4, %c0_5] : memref<1x8x128xbf16, #tpu.memory_space<vmem>>, vector<1x8x128xbf16>
    %9 = vector.shape_cast %8 : vector<1x8x128xbf16> to vector<8x128xbf16>
    %c0_6 = arith.constant 0 : index
    %c0_7 = arith.constant 0 : index
    %c0_8 = arith.constant 0 : index
    %10 = vector.load %arg2[%c0_6, %c0_7, %c0_8] : memref<1x128x128xbf16, #tpu.memory_space<vmem>>, vector<1x128x128xbf16>
    %11 = vector.shape_cast %10 : vector<1x128x128xbf16> to vector<128x128xbf16>
    %c0_9 = arith.constant 0 : index
    %c0_10 = arith.constant 0 : index
    %c0_11 = arith.constant 0 : index
    %12 = vector.load %arg4[%c0_9, %c0_10, %c0_11] : memref<1x8x2xf32, #tpu.memory_space<vmem>>, vector<1x8x2xf32>
    %13 = vector.shape_cast %12 : vector<1x8x2xf32> to vector<8x2xf32>
    %c0_12 = arith.constant 0 : index
    %c0_13 = arith.constant 0 : index
    %c0_14 = arith.constant 0 : index
    %14 = vector.load %arg3[%c0_12, %c0_13, %c0_14] : memref<1x2x128xf32, #tpu.memory_space<vmem>>, vector<1x2x128xf32>
    %15 = vector.shape_cast %14 : vector<1x2x128xf32> to vector<2x128xf32>
    %16 = vector.extract_strided_slice %13 {offsets = [0, 0], sizes = [8, 1], strides = [1, 1]} : vector<8x2xf32> to vector<8x1xf32>
    %17 = vector.extract_strided_slice %13 {offsets = [0, 1], sizes = [8, 1], strides = [1, 1]} : vector<8x2xf32> to vector<8x1xf32>
    %18 = vector.extract_strided_slice %15 {offsets = [0, 0], sizes = [1, 128], strides = [1, 1]} : vector<2x128xf32> to vector<1x128xf32>
    %19 = vector.extract_strided_slice %15 {offsets = [1, 0], sizes = [1, 128], strides = [1, 1]} : vector<2x128xf32> to vector<1x128xf32>
    %cst = arith.constant dense<0.000000e+00> : vector<8x128xf32>
    %20 = tpu.matmul %9, %11, %cst {dimension_numbers = #tpu.dot_dimension_numbers<[1], [1], [0], [0], [0, 0, 1, 0], [], []>} : vector<8x128xbf16>, vector<128x128xbf16>, vector<8x128xf32> -> vector<8x128xf32>
    %21 = vector.broadcast %16 : vector<8x1xf32> to vector<8x128xf32>
    %22 = arith.mulf %20, %21 : vector<8x128xf32>
    %23 = vector.broadcast %18 : vector<1x128xf32> to vector<8x128xf32>
    %24 = arith.mulf %22, %23 : vector<8x128xf32>
    %25 = vector.broadcast %19 : vector<1x128xf32> to vector<8x128xf32>
    %26 = arith.addf %24, %25 : vector<8x128xf32>
    %cst_15 = arith.constant -6.000000e-01 : f32
    %27 = vector.broadcast %cst_15 : f32 to vector<8x128xf32>
    %28 = arith.cmpf olt, %26, %27 : vector<8x128xf32>
    %29 = arith.extui %28 : vector<8x128xi1> to vector<8x128xi32>
    %30 = arith.sitofp %29 : vector<8x128xi32> to vector<8x128xf32>
    %31 = arith.truncf %30 : vector<8x128xf32> to vector<8x128xbf16>
    %cst_16 = arith.constant -2.000000e-01 : f32
    %32 = vector.broadcast %cst_16 : f32 to vector<8x128xf32>
    %33 = arith.cmpf olt, %26, %32 : vector<8x128xf32>
    %34 = arith.extui %33 : vector<8x128xi1> to vector<8x128xi32>
    %35 = arith.sitofp %34 : vector<8x128xi32> to vector<8x128xf32>
    %36 = arith.truncf %35 : vector<8x128xf32> to vector<8x128xbf16>
    %cst_17 = arith.constant 2.000000e-01 : f32
    %37 = vector.broadcast %cst_17 : f32 to vector<8x128xf32>
    %38 = arith.cmpf olt, %26, %37 : vector<8x128xf32>
    %39 = arith.extui %38 : vector<8x128xi1> to vector<8x128xi32>
    %40 = arith.sitofp %39 : vector<8x128xi32> to vector<8x128xf32>
    %41 = arith.truncf %40 : vector<8x128xf32> to vector<8x128xbf16>
    %cst_18 = arith.constant 6.000000e-01 : f32
    %42 = vector.broadcast %cst_18 : f32 to vector<8x128xf32>
    %43 = arith.cmpf olt, %26, %42 : vector<8x128xf32>
    %44 = arith.extui %43 : vector<8x128xi1> to vector<8x128xi32>
    %45 = arith.sitofp %44 : vector<8x128xi32> to vector<8x128xf32>
    %46 = arith.truncf %45 : vector<8x128xf32> to vector<8x128xbf16>
    %cst_19 = arith.constant 1.000000e+00 : f32
    %47 = vector.broadcast %cst_19 : f32 to vector<8x128xf32>
    %48 = arith.cmpf olt, %26, %47 : vector<8x128xf32>
    %49 = arith.extui %48 : vector<8x128xi1> to vector<8x128xi32>
    %50 = arith.sitofp %49 : vector<8x128xi32> to vector<8x128xf32>
    %51 = arith.truncf %50 : vector<8x128xf32> to vector<8x128xbf16>
    %cst_20 = arith.constant 1.000000e+00 : f32
    %52 = vector.broadcast %cst_20 : f32 to vector<8x128xf32>
    %53 = arith.subf %26, %52 : vector<8x128xf32>
    %54 = math.absf %53 : vector<8x128xf32>
    %cst_21 = arith.constant 1.000000e-03 : f32
    %55 = vector.broadcast %cst_21 : f32 to vector<8x128xf32>
    %56 = arith.cmpf olt, %54, %55 : vector<8x128xf32>
    %57 = arith.extui %56 : vector<8x128xi1> to vector<8x128xi32>
    %58 = arith.sitofp %57 : vector<8x128xi32> to vector<8x128xf32>
    %59 = arith.truncf %58 : vector<8x128xf32> to vector<8x128xbf16>
    %60 = tpu.concatenate %31, %36, %41, %46, %51, %59 in 1 : vector<8x128xbf16>, vector<8x128xbf16>, vector<8x128xbf16>, vector<8x128xbf16>, vector<8x128xbf16>, vector<8x128xbf16> -> vector<8x768xbf16>
    %cst_22 = arith.constant dense<0.000000e+00> : vector<8x6xf32>
    %61 = tpu.matmul %60, %0, %cst_22 {dimension_numbers = #tpu.dot_dimension_numbers<[1], [0], [0], [1], [0, 0, 1, 1], [], []>} : vector<8x768xbf16>, vector<768x6xbf16>, vector<8x6xf32> -> vector<8x6xf32>
    %cst_23 = arith.constant 1.000000e+00 : f32
    %62 = vector.broadcast %cst_23 : f32 to vector<8x6xf32>
    %63 = arith.addf %61, %62 : vector<8x6xf32>
    %64 = math.log %63 : vector<8x6xf32>
    %cst_24 = arith.constant dense<0.000000e+00> : vector<8x5xf32>
    %65 = tpu.matmul %64, %2, %cst_24 {dimension_numbers = #tpu.dot_dimension_numbers<[1], [0], [0], [1], [0, 0, 1, 1], [], []>} : vector<8x6xf32>, vector<6x5xf32>, vector<8x5xf32> -> vector<8x5xf32>
    %66 = vector.broadcast %3 : vector<1x5xf32> to vector<8x5xf32>
    %67 = arith.addf %65, %66 : vector<8x5xf32>
    %68 = math.tanh %67 : vector<8x5xf32>
    %69 = vector.broadcast %4 : vector<1x5xf32> to vector<8x5xf32>
    %70 = arith.mulf %68, %69 : vector<8x5xf32>
    %cst_25 = arith.constant dense<0.000000e+00> : vector<8xf32>
    %71 = vector.multi_reduction <add>, %70, %cst_25 [1] : vector<8x5xf32> to vector<8xf32>
    %72 = vector.shape_cast %71 : vector<8xf32> to vector<8x1xf32>
    %73 = vector.broadcast %5 : vector<1x1xf32> to vector<8x1xf32>
    %74 = arith.addf %72, %73 : vector<8x1xf32>
    %75 = math.tanh %74 : vector<8x1xf32>
    %76 = arith.mulf %17, %75 : vector<8x1xf32>
    %cst_26 = arith.constant dense<0.000000e+00> : vector<1xf32>
    %77 = vector.multi_reduction <add>, %76, %cst_26 [0] : vector<8x1xf32> to vector<1xf32>
    %78 = vector.shape_cast %77 : vector<1xf32> to vector<1x1xf32>
    %79 = arith.mulf %78, %6 : vector<1x1xf32>
    %80 = arith.addf %79, %7 : vector<1x1xf32>
    %81 = vector.shape_cast %80 : vector<1x1xf32> to vector<1x1xf32>
    %82 = vector.broadcast %81 : vector<1x1xf32> to vector<1x128xf32>
    %c0_27 = arith.constant 0 : index
    %c0_28 = arith.constant 0 : index
    %c0_29 = arith.constant 0 : index
    %83 = vector.load %arg7[%c0_27, %c0_28, %c0_29] : memref<1x1x128xf32, #tpu.memory_space<vmem>>, vector<1x1x128xf32>
    %84 = vector.shape_cast %83 : vector<1x1x128xf32> to vector<1x128xf32>
    %85 = vector.shape_cast %82 : vector<1x128xf32> to vector<1x1x128xf32>
    tpu.vector_store %arg7[%c0_27, %c0_28, %c0_29], %85 {strides = array<i32>} : memref<1x1x128xf32, #tpu.memory_space<vmem>>, vector<1x1x128xf32>,
    return
  }
  func.func @transform_0(%arg0: i32) -> (i32, i32, i32) {
    %c0_i32 = arith.constant 0 : i32
    %c0_i32_0 = arith.constant 0 : i32
    %c0_i32_1 = arith.constant 0 : i32
    return %arg0, %c0_i32, %c0_i32_0 : i32, i32, i32
  }
  func.func @transform_1(%arg0: i32) -> (i32, i32, i32) {
    %c0_i32 = arith.constant 0 : i32
    %c0_i32_0 = arith.constant 0 : i32
    %c0_i32_1 = arith.constant 0 : i32
    return %arg0, %c0_i32, %c0_i32_0 : i32, i32, i32
  }
  func.func @transform_2(%arg0: i32) -> (i32, i32, i32) {
    %c0_i32 = arith.constant 0 : i32
    %c0_i32_0 = arith.constant 0 : i32
    %c0_i32_1 = arith.constant 0 : i32
    return %arg0, %c0_i32, %c0_i32_0 : i32, i32, i32
  }
  func.func @transform_3(%arg0: i32) -> (i32, i32, i32) {
    %c0_i32 = arith.constant 0 : i32
    %c0_i32_0 = arith.constant 0 : i32
    %c0_i32_1 = arith.constant 0 : i32
    return %arg0, %c0_i32, %c0_i32_0 : i32, i32, i32
  }
  func.func @transform_4(%arg0: i32) -> (i32, i32) {
    %c0_i32 = arith.constant 0 : i32
    %c0_i32_0 = arith.constant 0 : i32
    %c0_i32_1 = arith.constant 0 : i32
    return %c0_i32, %c0_i32_0 : i32, i32
  }
  func.func @transform_5(%arg0: i32) -> (i32, i32) {
    %c0_i32 = arith.constant 0 : i32
    %c0_i32_0 = arith.constant 0 : i32
    %c0_i32_1 = arith.constant 0 : i32
    return %c0_i32, %c0_i32_0 : i32, i32
  }
  func.func @transform_6(%arg0: i32) -> (i32, i32, i32) {
    %c0_i32 = arith.constant 0 : i32
    %c0_i32_0 = arith.constant 0 : i32
    %c0_i32_1 = arith.constant 0 : i32
    return %arg0, %c0_i32, %c0_i32_0 : i32, i32, i32
  }
}

</mosaic_0001>

<bundles_post_ra>
// kernel: drmm_forward.1
= control target key start
LH: loop header
LB: loop body
LE: loop exit
PB: predicated region body
PF: predicated region fallthrough
CT: control target
= control target key end

     0   :  { %s1484_s21 = smov 0   ;;  %s1697_s0 = inlined_call_operand.vmem [shape: bf16[2,8,128], index: 0, kind: input, shape index: {}]   ;;  %s1698_s1 = inlined_call_operand.vmem [shape: bf16[2,128,128], index: 1, kind: input, shape index: {}]   ;;  %s1699_s2 = inlined_call_operand.vmem [shape: f32[2,2,128], index: 2, kind: input, shape index: {}]   ;;  %s1700_s3 = inlined_call_operand.vmem [shape: f32[2,8,2], index: 3, kind: input, shape index: {}]   ;;  %s1701_s4 = inlined_call_operand.vmem [shape: bf16[768,6], index: 4, kind: input, shape index: {}]   ;;  %s1702_s5 = inlined_call_operand.vmem [shape: f32[8,8], index: 5, kind: input, shape index: {}]   ;;  %s1703_s6 = inlined_call_operand.vmem [shape: f32[2,1,128], index: 6, kind: output, shape index: {}]  }
   0x1 LB: > { %s1162_s22 = sadd.s32 4294967295, %s1440_s21   ;;  %p1166_p0 = scmp.ge.s32.totalorder %s1440_s21, 1  ;;  %s1440_s21 = sphi %s1484_s21, %s16_s21  }
   0x2   : > { %p239_p1 = scmp.lt.s32.totalorder %s1440_s21, 3 }
   0x4   : > { %p240_p2 = pnand %p1166_p0, %p239_p1 }
   0x5   : > { %p279_p3 = scmp.lt.s32.totalorder (!%p240_p2), %s1162_s22, 1  ;;  %s1446_s27 = smov (!%p240_p2), 124  }
   0x6   : > { %243 = sbr.rel (%p240_p2) target bundleno = 1154 (0x482), region = 44  ;;  %s1447_s28 = smov (!%p240_p2), 122  }
   0xb   : > { %v1442_v0 = vmov 0.0   ;;  %vm1443_vm0 = vmmov 0   ;;  %v1380_v1 = vld [vmem:[%s1701_s4 + $0x78] sm:$0xff]   ;;  %s1705_s22 = smov (!%p279_p3, %s1162_s22), 1  ;;  %v1444_v2 = vmov 0   ;;  %v1382_v4 = vld [vmem:[%s1701_s4 + $0x70] sm:$0xff]   ;;  %v510_v45 = vlaneseq }
   0xc   : > { %1329 = vmatprep.subr.bf16.mxu0 %v1442_v0  ;;  %1345 = vmatprep.mubr.msk.bf16.mxu0 %vm1443_vm0, %v1442_v0  ;;  %v1381_v3 = vld [vmem:[%s1701_s4 + $0x38] sm:$0xff]   ;;  %s1251_s29 = sshll.u32 %s1705_s22, 6  ;;  %v1383_v5 = vld [vmem:[%s1701_s4 + $0x30] sm:$0xff]   ;;  %s1171_s11 = sshll.u32 %s1705_s22, 3  ;;  %v1386_v9 = vld [vmem:[%s1701_s4 + $0x68] sm:$0xff]   ;;  %vm964_vm13 = vcmask 1045504  }
   0xd   : > { %1369 = vset.pattern.permute.xlu0 %v1444_v2  ;;  %1261 = vmatprep.subr.bf16.mxu1 %v1380_v1  ;;  %s1513_s10 = scalar_lea.vmem %s1698_s1, %s1251_s29  ;;  %s295_s14 = scalar_lea.vmem %s1700_s3, %s1171_s11  ;;  %v1387_v10 = vld [vmem:[%s1701_s4 + $0x28] sm:$0xff]   ;;  %v1390_v12 = vld [vmem:[%s1701_s4 + $0x60] sm:$0xff]   ;;  %v1394_v14 = vld [vmem:[%s1701_s4 + $0x58] sm:$0xff]   ;;  %v1629_v46 = vshrl.u32 %v510_v45, 7  ;;  %v1445_v63 = vmov 1.0|1.0  }
   0xe   : > { %1262 = vmatpush3.bf16.msra.mxu1 %v1381_v3  ;;  %v1372_v6 = vld [vmem:[%s1513_s10 + $0x38] sm:$0xff]   ;;  %v1373_v7 = vld [vmem:[%s1513_s10 + $0x30] sm:$0xff]   ;;  %v1522_v8 = vld [vmem:[%s295_s14] sm:$0xff]  ;;  %s1167_s12 = sshll.u32 %s1705_s22, 2  ;;  %vm960_vm14 = vcmask 48128   ;;  %vm1044_vm15 = vcmask 39936   ;;  %s298_s7 = scalar_lea.vmem %s1703_s6, %s1705_s22 }
   0xf   : > { %1263 = vmatprep.subr.bf16.mxu1 %v1382_v4  ;;  %1330 = vmatpush3.bf16.xpose.msra.mxu0 %v1372_v6  ;;  %v1374_v11 = vld [vmem:[%s1513_s10 + $0x28] sm:$0xff]   ;;  %v1391_v13 = vld [vmem:[%s1701_s4 + $0x20] sm:$0xff]   ;;  %v1395_v15 = vld [vmem:[%s1701_s4 + $0x18] sm:$0xff]   ;;  %s282_s15 = scalar_lea.vmem %s1697_s0, %s1167_s12  ;;  %s1170_s12 = sshll.u32 %s1705_s22, 1  ;;  %v512_v47 = vsub.s32 0, %v1629_v46  ;;  %v517_v49 = vsub.s32 1, %v1629_v46 }
  0x10   : > { %1331 = vmatprep.subr.bf16.mxu0 %v1442_v0  ;;  %506 = vperm.xlu0 %1369, %v1522_v8   ;;  %v1375_v16 = vld [vmem:[%s1513_s10 + $0x20] sm:$0xff]   ;;  %v1398_v17 = vld [vmem:[%s1701_s4 + $0x50] sm:$0xff]   ;;  %v1376_v19 = vld [vmem:[%s1513_s10 + $0x18] sm:$0xff]  }
  0x11   : > { %v1399_v18 = vld [vmem:[%s1701_s4 + $0x10] sm:$0xff]   ;;  %v1378_v21 = vld [vmem:[%s1513_s10 + $0x8] sm:$0xff]   ;;  %v1379_v22 = vld [vmem:[%s1513_s10] sm:$0xff]  }
  0x12   : > { %1264 = vmatpush3.bf16.msra.mxu1 %v1383_v5  ;;  %v1377_v20 = vld [vmem:[%s1513_s10 + $0x10] sm:$0xff]   ;;  %v1384_v23 = vld [vmem:[%s1701_s4 + $0x178] sm:$0xff]   ;;  %v397_v24 = vld [vmem:[%s282_s15] sm:$0xf]  ;;  %s291_s15 = scalar_lea.vmem %s1699_s2, %s1170_s12 }
  0x13   : > { %1265 = vmatprep.subr.bf16.mxu1 %v1386_v9  ;;  %v1385_v25 = vld [vmem:[%s1701_s4 + $0x138] sm:$0xff]   ;;  %v1388_v26 = vld [vmem:[%s1701_s4 + $0x170] sm:$0xff]   ;;  %v1392_v28 = vld [vmem:[%s1701_s4 + $0x168] sm:$0xff]  }
  0x14   : > { %v1389_v27 = vld [vmem:[%s1701_s4 + $0x130] sm:$0xff]   ;;  %v1393_v29 = vld [vmem:[%s1701_s4 + $0x128] sm:$0xff]   ;;  %v1396_v30 = vld [vmem:[%s1701_s4 + $0x160] sm:$0xff]  }
  0x15   : > { %v1397_v31 = vld [vmem:[%s1701_s4 + $0x120] sm:$0xff]   ;;  %v1400_v32 = vld [vmem:[%s1701_s4 + $0x158] sm:$0xff]   ;;  %v1402_v34 = vld [vmem:[%s1701_s4 + $0x48] sm:$0xff]  }
  0x16   : > { %1266 = vmatpush3.bf16.msra.mxu1 %v1387_v10  ;;  %v1401_v33 = vld [vmem:[%s1701_s4 + $0x118] sm:$0xff]   ;;  %v1403_v35 = vld [vmem:[%s1701_s4 + $0x8] sm:$0xff]   ;;  %v1404_v36 = vld [vmem:[%s1701_s4 + $0x150] sm:$0xff]  }
  0x17   : > { %1332 = vmatpush3.bf16.xpose.msra.mxu0 %v1373_v7  ;;  %1267 = vmatprep.subr.bf16.mxu1 %v1390_v12  ;;  %v1405_v37 = vld [vmem:[%s1701_s4 + $0x110] sm:$0xff]   ;;  %v1406_v38 = vld [vmem:[%s1701_s4 + $0x40] sm:$0xff]   ;;  %v1408_v40 = vld [vmem:[%s1701_s4 + $0x148] sm:$0xff]  }
  0x18   : > { %1333 = vmatprep.subr.bf16.mxu0 %v1442_v0  ;;  %v1407_v39 = vld [vmem:[%s1701_s4] sm:$0xff]   ;;  %v1409_v41 = vld [vmem:[%s1701_s4 + $0x108] sm:$0xff]   ;;  %v1410_v42 = vld [vmem:[%s1701_s4 + $0xf8] sm:$0xff]  }
  0x19   : > { %v1412_v43 = vld [vmem:[%s1701_s4 + $0x140] sm:$0xff]   ;;  %v1411_v60 = vld [vmem:[%s1701_s4 + $0xb8] sm:$0xff]   ;;  %v1414_v61 = vld [vmem:[%s1701_s4 + $0xf0] sm:$0xff]  }
  0x1a   : > { %1268 = vmatpush3.bf16.msra.mxu1 %v1391_v13  ;;  %v1413_v44 = vld [vmem:[%s1701_s4 + $0x100] sm:$0xff]   ;;  %v1415_v2 = vld [vmem:[%s1701_s4 + $0xb0] sm:$0xff]   ;;  %v1416_v3 = vld [vmem:[%s1701_s4 + $0xe8] sm:$0xff]  }
  0x1b   : > { %1269 = vmatprep.subr.bf16.mxu1 %v1394_v14  ;;  %v415_v48 = vld [vmem:[%s291_s15] sm:$0x3]  ;;  %v1417_v4 = vld [vmem:[%s1701_s4 + $0xa8] sm:$0xff]   ;;  %v1420_v7 = vld [vmem:[%s1701_s4 + $0xd8] sm:$0xff]  }
  0x1c   : > { %v513_v51 = vrot.slane %v415_v48, %v512_v47  ;;  %v518_v54 = vrot.slane %v415_v48, %v517_v49  ;;  %v1418_v5 = vld [vmem:[%s1701_s4 + $0xe0] sm:$0xff]   ;;  %v1421_v9 = vld [vmem:[%s1701_s4 + $0x98] sm:$0xff]   ;;  %v1422_v10 = vld [vmem:[%s1701_s4 + $0xd0] sm:$0xff]  }
  0x1d   : > { %v1419_v6 = vld [vmem:[%s1701_s4 + $0xa0] sm:$0xff]   ;;  %v1424_v12 = vld [vmem:[%s1701_s4 + $0xc8] sm:$0xff]  }
  0x1e   : > { %1270 = vmatpush3.bf16.msra.mxu1 %v1395_v15  ;;  %v1425_v13 = vld [vmem:[%s1701_s4 + $0x88] sm:$0xff]   ;;  %v1426_v14 = vld [vmem:[%s1701_s4 + $0xc0] sm:$0xff]  }
  0x1f   : > { %1334 = vmatpush3.bf16.xpose.msra.mxu0 %v1374_v11  ;;  %1271 = vmatprep.subr.bf16.mxu1 %v1398_v17  ;;  %v1423_v11 = vld [vmem:[%s1701_s4 + $0x90] sm:$0xff]   ;;  %v1427_v15 = vld [vmem:[%s1701_s4 + $0x80] sm:$0xff]  }
  0x20   : > { %1335 = vmatprep.subr.bf16.mxu0 %v1442_v0 }
  0x22   : > { %1272 = vmatpush3.bf16.msra.mxu1 %v1399_v18 }
  0x23   : > { %1273 = vmatprep.subr.bf16.mxu1 %v1402_v34 }
  0x26   : > { %1274 = vmatpush3.bf16.msra.mxu1 %v1403_v35 }
  0x27   : > { %1336 = vmatpush3.bf16.xpose.msra.mxu0 %v1375_v16  ;;  %1275 = vmatprep.subr.bf16.mxu1 %v1406_v38  ;;  %v396_v16 = vld [vmem:[%s1702_s5] sm:$0xff] }
  0x28   : > { %1337 = vmatprep.subr.bf16.mxu0 %v1442_v0 }
  0x2a   : > { %1276 = vmatpush3.bf16.msra.mxu1 %v1407_v39 }
  0x2b   : > { %1283 = vmatprep.subr.bf16.mxu1 %v1410_v42 }
  0x2f   : > { %1338 = vmatpush3.bf16.xpose.msra.mxu0 %v1376_v19 }
  0x30   : > { %1339 = vmatprep.subr.bf16.mxu0 %v1442_v0 }
  0x37   : > { %1340 = vmatpush3.bf16.xpose.msra.mxu0 %v1377_v20 }
  0x38   : > { %1341 = vmatprep.subr.bf16.mxu0 %v1442_v0 }
  0x3f   : > { %1342 = vmatpush3.bf16.xpose.msra.mxu0 %v1378_v21 }
  0x40   : > { %1343 = vmatprep.subr.bf16.mxu0 %v1442_v0 }
  0x47   : > { %1344 = vmatpush3.bf16.xpose.msra.mxu0 %v1379_v22 }
  0x48   : > { %1305 = vmatprep.subr.bf16.mxu0 %v1384_v23 }
  0x4e   : > { %1346 = vmatmul.mubr.bf16.vlgmr.msra.gmra.mxu0 %v397_v24 }
  0x4f   : > { %1306 = vmatpush3.bf16.msra.mxu0 %v1385_v25 }
  0x50   : > { %1307 = vmatprep.subr.bf16.mxu0 %v1388_v26 }
  0x53   : > { %1308 = vmatpush3.bf16.msra.mxu0 %v1389_v27 }
  0x54   : > { %1309 = vmatprep.subr.bf16.mxu0 %v1392_v28 }
  0x57   : > { %1310 = vmatpush3.bf16.msra.mxu0 %v1393_v29 }
  0x58   : > { %1311 = vmatprep.subr.bf16.mxu0 %v1396_v30 }
  0x5b   : > { %1312 = vmatpush3.bf16.msra.mxu0 %v1397_v31 }
  0x5c   : > { %1313 = vmatprep.subr.bf16.mxu0 %v1400_v32 }
  0x5f   : > { %1314 = vmatpush3.bf16.msra.mxu0 %v1401_v33 }
  0x60   : > { %1315 = vmatprep.subr.bf16.mxu0 %v1404_v36  ;;  %v958_v36 = vsub.s32 6, %v1629_v46 }
  0x63   : > { %1316 = vmatpush3.bf16.msra.mxu0 %v1405_v37  ;;  %v959_v37 = vrot.slane %v396_v16, %v958_v36 }
  0x64   : > { %1317 = vmatprep.subr.bf16.mxu0 %v1408_v40 }
  0x67   : > { %1318 = vmatpush3.bf16.msra.mxu0 %v1409_v41  ;;  %v1041_v41 = vsub.s32 7, %v1629_v46 }
  0x68   : > { %1319 = vmatprep.subr.bf16.mxu0 %v1412_v43 }
  0x69   : > { %v1042_v42 = vrot.slane %v396_v16, %v1041_v41 }
  0x6b   : > { %1320 = vmatpush3.bf16.msra.mxu0 %v1413_v44 }
  0x8b   : > { %v507_v50 = vpop.permute.xlu0 %506 }
 0x10e   : > { %v498_v52 = vpop.f32.mrf.mxu0 }
 0x10f   : > { %v509_v53 = vmul.f32 %v507_v50, %v498_v52  ;;  %v1063_v50 = vrot.slane %v396_v16, 6  ;;  %v1448_v52 = vmov 1  }
 0x110   : > { %v1347_v55 = vpop.f32.mrf.mxu0  ;;  %1370 = vset.pattern.permute.xlu1 %v1448_v52  ;;  %1371 = vset.pattern.permute.xlu0 %v1448_v52 }
 0x111   : > { %v514_v56 = vmul.f32 %v513_v51, %v509_v53  ;;  %v1068_v51 = vrot.slane %v396_v16, 7 }
 0x112   : > { %v501_v57 = vpop.f32.mrf.mxu0 }
 0x113   : > { %v519_v58 = vadd.f32 %v518_v54, %v514_v56 }
 0x114   : > { %v1348_v59 = vpop.f32.mrf.mxu0 }
 0x115   : > { %vm524_vm1 = vcmp.lt.f32.partialorder %v519_v58, -0.2  ;;  %vm520_vm2 = vcmp.lt.f32.partialorder %v519_v58, -0.6  ;;  %vm532_vm3 = vcmp.lt.f32.partialorder %v519_v58, 0.6 }
 0x116   : > { %vm1235_vm4 = vmpackc.low %vm524_vm1, %vm524_vm1  ;;  %v1185_v62 = vadd.f32 -1.0, %v519_v58  ;;  %vm536_vm7 = vcmp.lt.f32.partialorder %v519_v58, 1.0  ;;  %vm528_vm11 = vcmp.lt.f32.partialorder %v519_v58, 0.2 }
 0x117   : > { %1236 = vmatprep.mubr.msk.bf16.mxu1 %vm1235_vm4, %v1445_v63  ;;  %vm1237_vm5 = vmpackc.low %vm520_vm2, %vm520_vm2 }
 0x118   : > { %1238 = vmatmul.mubr.msk.bf16.vlgmr.msra.gmra.mxu1 %vm1237_vm5, %v1445_v63  ;;  %vm1239_vm6 = vmpackc.low %vm532_vm3, %vm532_vm3  ;;  %v541_v1 = vand.u32 2147483647, %v1185_v62 }
 0x119   : > { %1284 = vmatpush3.bf16.msra.mxu1 %v1411_v60  ;;  %1240 = vmatprep.mubr.msk.bf16.mxu1 %vm1239_vm6, %v1445_v63  ;;  %vm1245_vm10 = vmpackc.low %vm536_vm7, %vm536_vm7 }
 0x11a   : > { %1285 = vmatprep.subr.bf16.mxu1 %v1414_v61  ;;  %vm542_vm8 = vcmp.lt.f32.partialorder %v541_v1, 0.001  ;;  %vm1241_vm12 = vmpackc.low %vm528_vm11, %vm528_vm11 }
 0x11b   : > { %vm1243_vm9 = vmpackc.low %vm542_vm8, %vm542_vm8 }
 0x11c   : > { %1244 = vmatprep.mubr.msk.bf16.mxu0 %vm1243_vm9, %v1445_v63 }
 0x11d   : > { %1286 = vmatpush3.bf16.msra.mxu1 %v1415_v2  ;;  %1246 = vmatmul.mubr.msk.bf16.vlgmr.msra.gmra.mxu0 %vm1245_vm10, %v1445_v63 }
 0x11e   : > { %1287 = vmatprep.subr.bf16.mxu1 %v1416_v3 }
 0x121   : > { %1288 = vmatpush3.bf16.msra.mxu1 %v1417_v4 }
 0x122   : > { %1289 = vmatprep.subr.bf16.mxu1 %v1418_v5 }
 0x125   : > { %1290 = vmatpush3.bf16.msra.mxu1 %v1419_v6 }
 0x126   : > { %1291 = vmatprep.subr.bf16.mxu1 %v1420_v7 }
 0x129   : > { %1292 = vmatpush3.bf16.msra.mxu1 %v1421_v9 }
 0x12a   : > { %1293 = vmatprep.subr.bf16.mxu1 %v1422_v10 }
 0x12d   : > { %1294 = vmatpush3.bf16.msra.mxu1 %v1423_v11 }
 0x12e   : > { %1295 = vmatprep.subr.bf16.mxu1 %v1424_v12 }
 0x131   : > { %1296 = vmatpush3.bf16.msra.mxu1 %v1425_v13 }
 0x132   : > { %1297 = vmatprep.subr.bf16.mxu1 %v1426_v14 }
 0x135   : > { %1298 = vmatpush3.bf16.msra.mxu1 %v1427_v15 }
 0x136   : > { %1349 = vmatprep.subr.mxu1 %v1442_v0 }
 0x138   : > { %1242 = vmatmul.mubr.msk.bf16.vlgmr.msra.gmra.mxu1 %vm1241_vm12, %v1445_v63 }
 0x139   : > { %1351 = vmatprep.mubr.msk.f32.mxu1 %vm1443_vm0, %v1442_v0  ;;  %1350 = vmatpush3.msk.msra.mxu1 %vm964_vm13, %v396_v16  ;;  %vm1055_vm0 = vcmask 15368  }
 0x1d8   : > { %v1277_v17 = vpop.f32.mrf.mxu1 }
 0x1da   : > { %v1278_v18 = vpop.f32.mrf.mxu1 }
 0x1db   : > { %v1279_v25 = vadd.f32 %v1278_v18, %v1277_v17 }
 0x1dc   : > { %v1280_v19 = vpop.f32.mrf.mxu1 }
 0x1dd   : > { %v1321_v20 = vpop.f32.mrf.mxu0  ;;  %v869_v28 = vadd.f32 1.0, %v1279_v25 }
 0x1de   : > { %v1281_v21 = vpop.f32.mrf.mxu1 }
 0x1df   : > { %v1322_v22 = vpop.f32.mrf.mxu0 }
 0x1e0   : > { %v1323_v30 = vadd.f32 %v1322_v22, %v1321_v20 }
 0x1e1   : > { %v1324_v23 = vpop.f32.mrf.mxu0 }
 0x1e3   : > { %v1325_v24 = vpop.f32.mrf.mxu0 }
 0x1f8   : > { %v1299_v26 = vpop.f32.mrf.mxu1 }
 0x1fa   : > { %v1300_v27 = vpop.f32.mrf.mxu1 }
 0x1fb   : > { %v1301_v29 = vadd.f32 %v1300_v27, %v1299_v26 }
 0x1fc   : > { %v1302_v0 = vpop.f32.mrf.mxu1 }
 0x1fd   : > { %v909_v31 = vadd.f32 %v1301_v29, %v869_v28 }
 0x1fe   : > { %v1303_v32 = vpop.f32.mrf.mxu1 }
 0x1ff   : > { %v949_v33 = vadd.f32 %v1323_v30, %v909_v31 }
 0x201   : > { %1428 = vlog2.f32 %v949_v33 }
 0x20e   : > { %v1429_v34 = vpop.eup %1428 }
 0x20f   : > { %v955_v35 = vmul.f32 0.6931472, %v1429_v34 }
 0x211   : > { %1352 = vmatmul.mubr.msk.f32.vlgmr.msra.gmra.mxu1 %vm960_vm14, %v955_v35 }
 0x2d1   : > { %v1034_v38 = vpop.f32.mrf.mxu1 }
 0x2d2   : > { %v1035_v39 = vadd.f32 %v1034_v38, %v959_v37 }
 0x2d3   : > { %v1353_v40 = vpop.f32.mrf.mxu1 }
 0x2d4   : > { %1430 = vtanh.f32 %v1035_v39 }
 0x2e1   : > { %v1431_v43 = vpop.eup %1430 }
 0x2e2   : > { %v1043_v44 = vmul.f32 %v1431_v43, %v1042_v42 }
 0x2e4   : > { %v1045_v45 = vsel %vm1044_vm15, %v1043_v44, 0.0 }
 0x2e5   : > { %1046 = vadd.xlane.f32.xlu0 %v1045_v45 }
 0x36e   : > { %v1047_v47 = vpop.xlane.xlu0 %1046 }
 0x36f   : > { %v1048_v48 = vadd.f32 %v1047_v47, %v959_v37 }
 0x371   : > { %1432 = vtanh.f32 %v1048_v48 }
 0x37e   : > { %v1433_v49 = vpop.eup %1432 }
 0x37f   : > { %1051 = vrot.lane.b32.xlu1 %v1433_v49, %s1446_s27 }
 0x383   : > { %1064 = vrot.lane.b32.xlu1 %v1063_v50, %s1447_s28 }
 0x387   : > { %1069 = vrot.lane.b32.xlu1 %v1068_v51, %s1446_s27 }
 0x3f1   : > { %v1052_v46 = vpop.permute.xlu1 %1051 }
 0x3f2   : > { %v1054_v53 = vmul.f32 %v1052_v46, %v1522_v8 }
 0x3f4   : > { %v1056_v54 = vsel %vm1055_vm0, %v1054_v53, 0.0 }
 0x3f5   : > { %v1057_v55 = vrot.slane %v1056_v54, 4  ;;  %v1065_v58 = vpop.permute.xlu1 %1064 }
 0x3f7   : > { %v1058_v56 = vadd.f32 %v1057_v55, %v1056_v54 }
 0x3f9   : > { %v1059_v57 = vrot.slane %v1058_v56, 2  ;;  %v1070_v62 = vpop.permute.xlu1 %1069 }
 0x3fb   : > { %v1060_v59 = vadd.f32 %v1059_v57, %v1058_v56 }
 0x3fd   : > { %v1061_v60 = vrot.slane %v1060_v59, 1 }
 0x3ff   : > { %v1062_v61 = vadd.f32 %v1061_v60, %v1060_v59 }
 0x401   : > { %v1067_v63 = vmul.f32 %v1065_v58, %v1062_v61 }
 0x403   : > { %v1072_v1 = vadd.f32 %v1070_v62, %v1067_v63 }
 0x405   : > { %1075 = vperm.xlu1 %1370, %v1072_v1  }
 0x480   : > { %v1076_v2 = vpop.permute.xlu1 %1075 }
 0x481   : > { %1078 = vst [vmem:[%s298_s7] sm:$0x1] %v1076_v2 }
 0x482 PF: > { %s16_s21 = sadd.s32 1, %s1440_s21  }
 0x483   : > { %p13_p4 = scmp.ge.s32.totalorder %s16_s21, 4  }
 0x485   :  { %15 = sbr.rel (!%p13_p4) target bundleno = 1 (0x1), region = 83 }

</bundles_post_ra>
